<compile_context>
chip_gen: v5e
topology: v5e:2x2
jax: 0.10.0
libtpu: 0.0.40
codegen_flags: <defaults>
</compile_context>

<pallas_src>
import functools

import jax
import jax.numpy as jnp
from jax.experimental import pallas as pl
from jax.experimental.pallas import tpu as pltpu

INPUT_DIM = 200
HIDDEN1 = 128
HIDDEN2 = 64
H2_PAD = 128          # lane-dense padded hidden2 width
OUTPUT_DIM = 6
OUT_PAD = 8           # 6 -> 8 so the output block's last dim equals the array dim
DEFAULT_TILE_B = 1024  # batch tile (per-step footprint ~2.5 MiB incl. buffers)


def _round_up(n, m):
    return (n + m - 1) // m * m


def dqn_kernel(x_ref, w1_ref, b1_ref, w2_ref, b2_ref, w3_ref, b3_ref, o_ref):
    # Layer 1: Linear(200 -> 128) + ReLU.  bf16 into the MXU, f32 accumulate;
    # bias-add / ReLU in f32 on the VPU.
    x = x_ref[...].astype(jnp.bfloat16)
    h1 = jnp.dot(x, w1_ref[...], preferred_element_type=jnp.float32)
    h1 = jnp.maximum(h1 + b1_ref[...], 0.0)
    # Layer 2: Linear(128 -> 64), zero-padded to 128 lanes (+ ReLU).
    h2 = jnp.dot(h1.astype(jnp.bfloat16), w2_ref[...],
                 preferred_element_type=jnp.float32)
    h2 = jnp.maximum(h2 + b2_ref[...], 0.0)
    # Layer 3: Linear(64 -> 6), zero-padded rows (h2 pad) and cols 6 -> 8.
    out = jnp.dot(h2.astype(jnp.bfloat16), w3_ref[...],
                  preferred_element_type=jnp.float32)
    o_ref[...] = (out + b3_ref[...]).astype(o_ref.dtype)


@functools.partial(jax.jit, static_argnames=("tile_b",))
def dqn_forward(x, params, tile_b=DEFAULT_TILE_B):
    w1, b1, w2, b2, w3, b3 = params
    batch = x.shape[0]

    # Batch tile: never exceed tile_b, and prefer >= 2 grid steps so the
    # "parallel" batch axis can be split across the 2 TensorCores on v7x.
    tb = max(8, min(tile_b, _round_up(pl.cdiv(batch, 2), 8)))
    grid = (pl.cdiv(batch, tb),)   # ragged last block handled by Pallas

    # Weights as bf16 MXU operands, resident in VMEM across all grid steps.
    w1b = w1.astype(jnp.bfloat16)
    w2b = jnp.pad(w2, ((0, 0), (0, H2_PAD - HIDDEN2))).astype(jnp.bfloat16)
    b2p = jnp.pad(b2, ((0, 0), (0, H2_PAD - HIDDEN2)))
    w3b = jnp.pad(w3, ((0, H2_PAD - HIDDEN2),
                       (0, OUT_PAD - OUTPUT_DIM))).astype(jnp.bfloat16)
    b3p = jnp.pad(b3, ((0, 0), (0, OUT_PAD - OUTPUT_DIM)))

    flops = 2 * batch * (INPUT_DIM * HIDDEN1
                         + HIDDEN1 * H2_PAD
                         + H2_PAD * OUT_PAD)
    bytes_accessed = (batch * INPUT_DIM * x.dtype.itemsize      # x
                      + batch * OUT_PAD * 4                     # output (8 lanes)
                      + (INPUT_DIM * HIDDEN1 + HIDDEN1 * H2_PAD
                         + H2_PAD * OUT_PAD) * 2                # bf16 weights
                      + (HIDDEN1 + H2_PAD + OUT_PAD) * 4)       # f32 biases

    out = pl.pallas_call(
        dqn_kernel,
        out_shape=jax.ShapeDtypeStruct((batch, OUT_PAD), jnp.float32),
        grid_spec=pltpu.PrefetchScalarGridSpec(
            num_scalar_prefetch=0,
            grid=grid,
            in_specs=[
                pl.BlockSpec((tb, INPUT_DIM), lambda i: (i, 0)),       # x tile
                pl.BlockSpec((INPUT_DIM, HIDDEN1), lambda i: (0, 0)),  # w1
                pl.BlockSpec((1, HIDDEN1), lambda i: (0, 0)),          # b1
                pl.BlockSpec((HIDDEN1, H2_PAD), lambda i: (0, 0)),     # w2 (padded)
                pl.BlockSpec((1, H2_PAD), lambda i: (0, 0)),           # b2 (padded)
                pl.BlockSpec((H2_PAD, OUT_PAD), lambda i: (0, 0)),     # w3 (padded)
                pl.BlockSpec((1, OUT_PAD), lambda i: (0, 0)),          # b3 (padded)
            ],
            out_specs=pl.BlockSpec((tb, OUT_PAD), lambda i: (i, 0)),
        ),
        compiler_params=pltpu.CompilerParams(
            dimension_semantics=("parallel",)),
        cost_estimate=pl.CostEstimate(flops=flops, transcendentals=0,
                                      bytes_accessed=bytes_accessed),
    )(x, w1b, b1, w2b, b2p, w3b, b3p)

    return out[:, :OUTPUT_DIM]


def init_params(key):
    """Deterministic init mimicking PyTorch Linear default (uniform +-1/sqrt(fan_in))."""
    def linear(key, fan_in, fan_out):
        kw, kb = jax.random.split(key)
        bound = 1.0 / jnp.sqrt(fan_in)
        w = jax.random.uniform(kw, (fan_in, fan_out), jnp.float32, -bound, bound)
        b = jax.random.uniform(kb, (1, fan_out), jnp.float32, -bound, bound)
        return w, b

    k1, k2, k3 = jax.random.split(key, 3)
    w1, b1 = linear(k1, INPUT_DIM, HIDDEN1)
    w2, b2 = linear(k2, HIDDEN1, HIDDEN2)
    w3, b3 = linear(k3, HIDDEN2, OUTPUT_DIM)
    return (w1, b1, w2, b2, w3, b3)


def dqn_reference(x, params, match_kernel_precision=True):
    """Pure-JAX reference.  With match_kernel_precision=True it mirrors the
    kernel's bf16-MXU / f32-accumulate numerics; False is the exact PyTorch
    f32 semantics."""
    w1, b1, w2, b2, w3, b3 = params
    cast = (lambda a: a.astype(jnp.bfloat16)) if match_kernel_precision else (lambda a: a)
    h1 = jnp.maximum(
        jnp.dot(cast(x), cast(w1), preferred_element_type=jnp.float32) + b1, 0.0)
    h2 = jnp.maximum(
        jnp.dot(cast(h1), cast(w2), preferred_element_type=jnp.float32) + b2, 0.0)
    return jnp.dot(cast(h2), cast(w3), preferred_element_type=jnp.float32) + b3


if __name__ == "__main__":
    key = jax.random.PRNGKey(0)
    kx, kp = jax.random.split(key)
    params = init_params(kp)

    # Small batch (single grid step, partial block: batch=2 < tile of 8 rows).
    x_small = jax.random.normal(kx, (2, INPUT_DIM), jnp.float32)
    out_small = jax.block_until_ready(dqn_forward(x_small, params))
    assert out_small.shape == (2, OUTPUT_DIM)
    ref_small = dqn_reference(x_small, params)
    assert jnp.allclose(out_small, ref_small, atol=2e-3, rtol=2e-3)

    # Unaligned batch (exercises ragged last block + 2-step grid + resident weights).
    x_big = jax.random.normal(kx, (300, INPUT_DIM), jnp.float32)
    out_big = jax.block_until_ready(dqn_forward(x_big, params))
    assert out_big.shape == (300, OUTPUT_DIM)
    ref_big = dqn_reference(x_big, params)
    assert jnp.allclose(out_big, ref_big, atol=2e-3, rtol=2e-3)

    # Sanity check against exact f32 PyTorch semantics (looser tolerance because
    # the kernel intentionally uses bf16 MXU inputs with f32 accumulation).
    ref_f32 = dqn_reference(x_small, params, match_kernel_precision=False)
    assert jnp.allclose(out_small, ref_f32, atol=5e-2, rtol=5e-2)

    print("KERNEL_OK")
</pallas_src>

<mosaic_0001>
module attributes {stable_mosaic.version = 11 : i64} {
  func.func @dqn_kernel(%arg0: i32, %arg1: memref<8x200xf32, #tpu.memory_space<vmem>>, %arg2: memref<200x128xbf16, #tpu.memory_space<vmem>>, %arg3: memref<1x128xf32, #tpu.memory_space<vmem>>, %arg4: memref<128x128xbf16, #tpu.memory_space<vmem>>, %arg5: memref<1x128xf32, #tpu.memory_space<vmem>>, %arg6: memref<128x8xbf16, #tpu.memory_space<vmem>>, %arg7: memref<1x8xf32, #tpu.memory_space<vmem>>, %arg8: memref<8x8xf32, #tpu.memory_space<vmem>>) attributes {dimension_semantics = [#tpu.dimension_semantics<parallel>], iteration_bounds = array<i64: 1>, scalar_prefetch = 0 : i64, scratch_operands = 0 : i64, tpu.core_type = #tpu.core_type<tc>, window_params = [{transform_indices = @transform_0, window_bounds = array<i64: 8, 200>}, {pipeline_mode = #tpu.pipeline_mode<synchronous>, transform_indices = @transform_1, window_bounds = array<i64: 200, 128>}, {pipeline_mode = #tpu.pipeline_mode<synchronous>, transform_indices = @transform_2, window_bounds = array<i64: 1, 128>}, {pipeline_mode = #tpu.pipeline_mode<synchronous>, transform_indices = @transform_3, window_bounds = array<i64: 128, 128>}, {pipeline_mode = #tpu.pipeline_mode<synchronous>, transform_indices = @transform_4, window_bounds = array<i64: 1, 128>}, {pipeline_mode = #tpu.pipeline_mode<synchronous>, transform_indices = @transform_5, window_bounds = array<i64: 128, 8>}, {pipeline_mode = #tpu.pipeline_mode<synchronous>, transform_indices = @transform_6, window_bounds = array<i64: 1, 8>}, {transform_indices = @transform_7, window_bounds = array<i64: 8, 8>}]} {
    %c0 = arith.constant 0 : index
    %c0_0 = arith.constant 0 : index
    %0 = vector.load %arg1[%c0, %c0_0] : memref<8x200xf32, #tpu.memory_space<vmem>>, vector<8x200xf32>
    %1 = arith.truncf %0 : vector<8x200xf32> to vector<8x200xbf16>
    %c0_1 = arith.constant 0 : index
    %c0_2 = arith.constant 0 : index
    %2 = vector.load %arg2[%c0_1, %c0_2] : memref<200x128xbf16, #tpu.memory_space<vmem>>, vector<200x128xbf16>
    %cst = arith.constant dense<0.000000e+00> : vector<8x128xf32>
    %3 = tpu.matmul %1, %2, %cst {dimension_numbers = #tpu.dot_dimension_numbers<[1], [0], [0], [1], [0, 0, 1, 1], [], []>} : vector<8x200xbf16>, vector<200x128xbf16>, vector<8x128xf32> -> vector<8x128xf32>
    %c0_3 = arith.constant 0 : index
    %c0_4 = arith.constant 0 : index
    %4 = vector.load %arg3[%c0_3, %c0_4] : memref<1x128xf32, #tpu.memory_space<vmem>>, vector<1x128xf32>
    %5 = vector.broadcast %4 : vector<1x128xf32> to vector<8x128xf32>
    %6 = arith.addf %3, %5 : vector<8x128xf32>
    %cst_5 = arith.constant 0.000000e+00 : f32
    %7 = vector.broadcast %cst_5 : f32 to vector<8x128xf32>
    %8 = arith.maximumf %6, %7 : vector<8x128xf32>
    %9 = arith.truncf %8 : vector<8x128xf32> to vector<8x128xbf16>
    %c0_6 = arith.constant 0 : index
    %c0_7 = arith.constant 0 : index
    %10 = vector.load %arg4[%c0_6, %c0_7] : memref<128x128xbf16, #tpu.memory_space<vmem>>, vector<128x128xbf16>
    %cst_8 = arith.constant dense<0.000000e+00> : vector<8x128xf32>
    %11 = tpu.matmul %9, %10, %cst_8 {dimension_numbers = #tpu.dot_dimension_numbers<[1], [0], [0], [1], [0, 0, 1, 1], [], []>} : vector<8x128xbf16>, vector<128x128xbf16>, vector<8x128xf32> -> vector<8x128xf32>
    %c0_9 = arith.constant 0 : index
    %c0_10 = arith.constant 0 : index
    %12 = vector.load %arg5[%c0_9, %c0_10] : memref<1x128xf32, #tpu.memory_space<vmem>>, vector<1x128xf32>
    %13 = vector.broadcast %12 : vector<1x128xf32> to vector<8x128xf32>
    %14 = arith.addf %11, %13 : vector<8x128xf32>
    %cst_11 = arith.constant 0.000000e+00 : f32
    %15 = vector.broadcast %cst_11 : f32 to vector<8x128xf32>
    %16 = arith.maximumf %14, %15 : vector<8x128xf32>
    %17 = arith.truncf %16 : vector<8x128xf32> to vector<8x128xbf16>
    %c0_12 = arith.constant 0 : index
    %c0_13 = arith.constant 0 : index
    %18 = vector.load %arg6[%c0_12, %c0_13] : memref<128x8xbf16, #tpu.memory_space<vmem>>, vector<128x8xbf16>
    %cst_14 = arith.constant dense<0.000000e+00> : vector<8x8xf32>
    %19 = tpu.matmul %17, %18, %cst_14 {dimension_numbers = #tpu.dot_dimension_numbers<[1], [0], [0], [1], [0, 0, 1, 1], [], []>} : vector<8x128xbf16>, vector<128x8xbf16>, vector<8x8xf32> -> vector<8x8xf32>
    %c0_15 = arith.constant 0 : index
    %c0_16 = arith.constant 0 : index
    %20 = vector.load %arg7[%c0_15, %c0_16] : memref<1x8xf32, #tpu.memory_space<vmem>>, vector<1x8xf32>
    %21 = vector.broadcast %20 : vector<1x8xf32> to vector<8x8xf32>
    %22 = arith.addf %19, %21 : vector<8x8xf32>
    %c0_17 = arith.constant 0 : index
    %c0_18 = arith.constant 0 : index
    %23 = vector.load %arg8[%c0_17, %c0_18] : memref<8x8xf32, #tpu.memory_space<vmem>>, vector<8x8xf32>
    tpu.vector_store %arg8[%c0_17, %c0_18], %22 {strides = array<i32>} : memref<8x8xf32, #tpu.memory_space<vmem>>, vector<8x8xf32>,
    return
  }
  func.func @transform_0(%arg0: i32) -> (i32, i32) {
    %c0_i32 = arith.constant 0 : i32
    %c0_i32_0 = arith.constant 0 : i32
    return %arg0, %c0_i32 : i32, i32
  }
  func.func @transform_1(%arg0: i32) -> (i32, i32) {
    %c0_i32 = arith.constant 0 : i32
    %c0_i32_0 = arith.constant 0 : i32
    %c0_i32_1 = arith.constant 0 : i32
    return %c0_i32, %c0_i32_0 : i32, i32
  }
  func.func @transform_2(%arg0: i32) -> (i32, i32) {
    %c0_i32 = arith.constant 0 : i32
    %c0_i32_0 = arith.constant 0 : i32
    %c0_i32_1 = arith.constant 0 : i32
    return %c0_i32, %c0_i32_0 : i32, i32
  }
  func.func @transform_3(%arg0: i32) -> (i32, i32) {
    %c0_i32 = arith.constant 0 : i32
    %c0_i32_0 = arith.constant 0 : i32
    %c0_i32_1 = arith.constant 0 : i32
    return %c0_i32, %c0_i32_0 : i32, i32
  }
  func.func @transform_4(%arg0: i32) -> (i32, i32) {
    %c0_i32 = arith.constant 0 : i32
    %c0_i32_0 = arith.constant 0 : i32
    %c0_i32_1 = arith.constant 0 : i32
    return %c0_i32, %c0_i32_0 : i32, i32
  }
  func.func @transform_5(%arg0: i32) -> (i32, i32) {
    %c0_i32 = arith.constant 0 : i32
    %c0_i32_0 = arith.constant 0 : i32
    %c0_i32_1 = arith.constant 0 : i32
    return %c0_i32, %c0_i32_0 : i32, i32
  }
  func.func @transform_6(%arg0: i32) -> (i32, i32) {
    %c0_i32 = arith.constant 0 : i32
    %c0_i32_0 = arith.constant 0 : i32
    %c0_i32_1 = arith.constant 0 : i32
    return %c0_i32, %c0_i32_0 : i32, i32
  }
  func.func @transform_7(%arg0: i32) -> (i32, i32) {
    %c0_i32 = arith.constant 0 : i32
    %c0_i32_0 = arith.constant 0 : i32
    return %arg0, %c0_i32 : i32, i32
  }
}

</mosaic_0001>

<bundles_post_ra>
// kernel: dqn_forward.1
= control target key start
LH: loop header
LB: loop body
LE: loop exit
PB: predicated region body
PF: predicated region fallthrough
CT: control target
= control target key end

     0   :  { %12 = vsyncpa [#allocation3], 0  ;;  %vm157_vm0 = vcmask 1043456   ;;  %vm153_vm1 = vcmask 588800   ;;  %vm353_vm2 = vcmask 64512   ;;  %s700_s0 = inlined_call_operand.vmem [shape: f32[2,200], index: 0, kind: input, shape index: {}]   ;;  %s701_s1 = inlined_call_operand.vmem [shape: bf16[200,128], index: 1, kind: input, shape index: {}]   ;;  %s702_s2 = inlined_call_operand.vmem [shape: f32[1,128], index: 2, kind: input, shape index: {}]   ;;  %s703_s3 = inlined_call_operand.vmem [shape: bf16[128,128], index: 3, kind: input, shape index: {}]   ;;  %s704_s4 = inlined_call_operand.vmem [shape: f32[1,128], index: 4, kind: input, shape index: {}]   ;;  %s705_s5 = inlined_call_operand.vmem [shape: bf16[128,8], index: 5, kind: input, shape index: {}]   ;;  %s706_s6 = inlined_call_operand.vmem [shape: f32[1,8], index: 6, kind: input, shape index: {}]   ;;  %s707_s7 = inlined_call_operand.hbm [shape: f32[2,8], index: 7, kind: output, shape index: {}]  }
   0x1   :  { %v493_v0 = vld [vmem:[%s701_s1 + $0x38] sm:$0xff]  ;;  %v73_v1 = vld [vmem:[%s701_s1 + $0x60] sm:$0xf]  ;;  %v492_v2 = vld [vmem:[%s701_s1 + $0x30] sm:$0xff] }
   0x2   :  { %161 = vmatpush.bf16.msra.mxu0 %v493_v0  ;;  %v127_v3 = vunpack.c.l.b16 %v73_v1  ;;  %v28_v5 = vld [vmem:[%s700_s0] sm:$0xf]  ;;  %v29_v6 = vld [vmem:[%s700_s0 + $0x4] sm:$0xf]  ;;  %v30_v7 = vld [vmem:[%s700_s0 + $0x8] sm:$0xf] }
   0x3   :  { %v31_v8 = vld [vmem:[%s700_s0 + $0xc] sm:$0xf]  ;;  %36 = vst [vmem:[#allocation1] ss:$4 sm:$0xff] %v28_v5  ;;  %v505_v11 = vld [vmem:[%s703_s3 + $0x38] sm:$0xff]  ;;  %v504_v13 = vld [vmem:[%s703_s3 + $0x30] sm:$0xff] }
   0x4   :  { %v140_v4 = vpack.c.b16 %v127_v3, %v127_v3  ;;  %v491_v10 = vld [vmem:[%s701_s1 + $0x28] sm:$0xff]  ;;  %38 = vst [vmem:[#allocation1 + $0x1] ss:$4 sm:$0xff] %v29_v6  ;;  %v497_v12 = vld [vmem:[%s701_s1 + $0x58] sm:$0xff]  ;;  %257 = vmatpush.bf16.msra.mxu2 %v505_v11  ;;  %v490_v14 = vld [vmem:[%s701_s1 + $0x20] sm:$0xff] }
   0x5   :  { %40 = vst [vmem:[#allocation1 + $0x2] ss:$4 sm:$0xff] %v30_v7  ;;  %v496_v15 = vld [vmem:[%s701_s1 + $0x50] sm:$0xff]  ;;  %v503_v16 = vld [vmem:[%s703_s3 + $0x28] sm:$0xff]  ;;  %v489_v17 = vld [vmem:[%s701_s1 + $0x18] sm:$0xff] }
   0x6   :  { %162 = vmatpush.bf16.msra.mxu0 %v492_v2  ;;  %v159_v9 = vsel %vm157_vm0, %v140_v4, 0  ;;  %42 = vst [vmem:[#allocation1 + $0x3] ss:$4 sm:$0xff] %v31_v8  ;;  %v495_v18 = vld [vmem:[%s701_s1 + $0x48] sm:$0xff]  ;;  %v502_v19 = vld [vmem:[%s703_s3 + $0x20] sm:$0xff]  ;;  %v488_v20 = vld [vmem:[%s701_s1 + $0x10] sm:$0xff] }
   0x7   :  { %177 = vmatpush.bf16.msra.mxu1 %v159_v9  ;;  %v494_v21 = vld [vmem:[%s701_s1 + $0x40] sm:$0xff]  ;;  %v487_v23 = vld [vmem:[%s701_s1 + $0x8] sm:$0xff]  ;;  %v501_v28 = vld [vmem:[%s703_s3 + $0x18] sm:$0xff] }
   0x8   :  { %258 = vmatpush.bf16.msra.mxu2 %v504_v13  ;;  %v486_v25 = vld [vmem:[%s701_s1] sm:$0xff]  ;;  %v500_v29 = vld [vmem:[%s703_s3 + $0x10] sm:$0xff]  ;;  %v499_v30 = vld [vmem:[%s703_s3 + $0x8] sm:$0xff] }
   0x9   :  { %v498_v31 = vld [vmem:[%s703_s3] sm:$0xff]  ;;  %v513_v32 = vld [vmem:[%s705_s5 + $0x38] sm:$0xff]  ;;  %v512_v33 = vld [vmem:[%s705_s5 + $0x30] sm:$0xff] }
   0xa   :  { %163 = vmatpush.bf16.msra.mxu0 %v491_v10  ;;  %340 = vmatpush.bf16.msra.mxu3 %v513_v32  ;;  %v511_v34 = vld [vmem:[%s705_s5 + $0x28] sm:$0xff]  ;;  %v510_v35 = vld [vmem:[%s705_s5 + $0x20] sm:$0xff]  ;;  %v509_v36 = vld [vmem:[%s705_s5 + $0x18] sm:$0xff] }
   0xb   :  { %178 = vmatpush.bf16.msra.mxu1 %v497_v12  ;;  %v508_v38 = vld [vmem:[%s705_s5 + $0x10] sm:$0xff]  ;;  %v517_v39 = vld [vmem:[%s702_s2] ss:$0 sm:$0xff]  ;;  %v507_v47 = vld [vmem:[%s705_s5 + $0x8] sm:$0xff] }
   0xc   :  { %259 = vmatpush.bf16.msra.mxu2 %v503_v16  ;;  %v506_v48 = vld [vmem:[%s705_s5] sm:$0xff] }
   0xd   :  { %v44_v22 = vld.sshfl [vmem:[#allocation1 + $0x8] sm:$0xff pattern:$0x73625140]  ;;  %v43_v26 = vld.sshfl [vmem:[#allocation1] sm:$0xff pattern:$0x73625140] }
   0xe   :  { %164 = vmatpush.bf16.msra.mxu0 %v490_v14  ;;  %v48_v24 = vpack.c.bf16 %v44_v22, %v44_v22  ;;  %v47_v27 = vpack.c.bf16 %v43_v26, %v43_v26  ;;  %341 = vmatpush.bf16.msra.mxu3 %v512_v33  ;;  %v518_v49 = vld [vmem:[%s704_s4] ss:$0 sm:$0xff] }
   0xf   :  { %179 = vmatpush.bf16.msra.mxu1 %v496_v15  ;;  %v519_v55 = vld [vmem:[%s706_s6] ss:$0 sm:$0xff] }
  0x10   :  { %260 = vmatpush.bf16.msra.mxu2 %v502_v19 }
  0x12   :  { %165 = vmatpush.bf16.msra.mxu0 %v489_v17  ;;  %342 = vmatpush.bf16.msra.mxu3 %v511_v34 }
  0x13   :  { %180 = vmatpush.bf16.msra.mxu1 %v495_v18 }
  0x14   :  { %261 = vmatpush.bf16.msra.mxu2 %v501_v28 }
  0x16   :  { %166 = vmatpush.bf16.msra.mxu0 %v488_v20  ;;  %343 = vmatpush.bf16.msra.mxu3 %v510_v35 }
  0x17   :  { %181 = vmatpush.bf16.msra.mxu1 %v494_v21 }
  0x18   :  { %262 = vmatpush.bf16.msra.mxu2 %v500_v29 }
  0x1a   :  { %167 = vmatpush.bf16.msra.mxu0 %v487_v23  ;;  %421 = vmatmul.msk.bf16.vlgmr.msra.gmra.mxu1 %vm153_vm1, %v48_v24 }
  0x1b   :  { %344 = vmatpush.bf16.msra.mxu3 %v509_v36 }
  0x1c   :  { %263 = vmatpush.bf16.msra.mxu2 %v499_v30 }
  0x1e   :  { %168 = vmatpush.bf16.msra.mxu0 %v486_v25 }
  0x1f   :  { %345 = vmatpush.bf16.msra.mxu3 %v508_v38 }
  0x20   :  { %264 = vmatpush.bf16.msra.mxu2 %v498_v31 }
  0x21   :  { %169 = vmatmul.bf16.vlgmr.msra.gmra.mxu0 %v47_v27 }
  0x23   :  { %346 = vmatpush.bf16.msra.mxu3 %v507_v47 }
  0x27   :  { %347 = vmatpush.bf16.msra.mxu3 %v506_v48 }
  0x97   :  { %v183_v37 = vpop.f32.mrf.mxu1 }
  0x9e   :  { %v170_v40 = vpop.f32.mrf.mxu0 }
  0x9f   :  { %v171_v41 = vadd.f32 %v517_v39, %v170_v40  ;;  %v185_v42 = vpop.f32.mrf.mxu1 }
  0xa1   :  { %v184_v43 = vadd.f32 %v183_v37, %v171_v41 }
  0xa3   :  { %v187_v44 = vmax.f32 %v184_v43, 0.0 }
  0xa5   :  { %v188_v45 = vpack.c.bf16 %v187_v44, %v187_v44 }
  0xa6   :  { %v172_v46 = vpop.f32.mrf.mxu0 }
  0xa7   :  { %265 = vmatmul.bf16.vlgmr.msra.gmra.mxu2 %v188_v45 }
 0x12a   :  { %v266_v50 = vpop.f32.mrf.mxu2 }
 0x12b   :  { %v267_v51 = vadd.f32 %v518_v49, %v266_v50 }
 0x12d   :  { %v270_v52 = vmax.f32 %v267_v51, 0.0 }
 0x12f   :  { %v271_v53 = vpack.c.bf16 %v270_v52, %v270_v52 }
 0x131   :  { %348 = vmatmul.bf16.vlgmr.msra.gmra.mxu3 %v271_v53 }
 0x132   :  { %v268_v54 = vpop.f32.mrf.mxu2 }
 0x1b4   :  { %v349_v56 = vpop.f32.mrf.mxu3 }
 0x1b5   :  { %v350_v57 = vadd.f32 %v519_v55, %v349_v56 }
 0x1b7   :  { %354 = vst.msk [vmem:[#allocation2] sm:$0xff] %vm353_vm2, %v350_v57 }
 0x1bc   :  { %v351_v58 = vpop.f32.mrf.mxu3 }
 0x1bd   :  { %358 = vsyncadd [#allocation3], 96  ;;  %s361_s4 = sshll.u32 %s707_s7, 4  ;;  %s546_s22 = smov [#allocation2]   ;;  %s362_s4 = int_to_ptr.hbm [resolvable:$true] %s361_s4 }
 0x1be   :  { %s359_s23 = sshll.u32 %s546_s22, 4  ;;  %s547_s1 = smov 32   ;;  %s360_s23 = int_to_ptr.vmem [resolvable:$true] %s359_s23 }
 0x1bf   :  { %s548_s24 = smov 2  }
 0x1c0   :  { %367 = dma.vmem_to_hbm [thread:$0]  %s360_s23, 32, %s362_s4, [#allocation3], %s547_s1, %s547_s1, %s548_s24  }
 0x1c1   :  { %544 = dma.done.wait [#allocation3], 128  }
 0x1c2   :  { %545 = vsyncadd [#allocation3], 4294967168 }
 0x1c3   :  { %372 = vsyncpa [#allocation3], 1 }

</bundles_post_ra>
